<compile_context>
chip_gen: v5e
topology: v5e:2x2
jax: 0.10.0
libtpu: 0.0.40
codegen_flags: <defaults>
</compile_context>

<pallas_src>
import math

import jax
import jax.numpy as jnp
from jax.experimental import pallas as pl
from jax.experimental.pallas import tpu as pltpu


def _round_down(x, m):
    return x // m * m


def _to_rgb_kernel(x_ref, w_ref, b_ref, o_ref):
    # x_ref: (C, thw)   w_ref: (O, C)   b_ref: (O, 1)   o_ref: (O, thw)
    # Tiny M=O / K=C matmul: the kernel is pure HBM bandwidth, MXU is ~idle,
    # so HIGHEST precision (full f32 passes) is free.
    y = jnp.dot(
        w_ref[...],
        x_ref[...],
        preferred_element_type=jnp.float32,
        precision=jax.lax.Precision.HIGHEST,
    )
    o_ref[...] = (y + b_ref[...]).astype(o_ref.dtype)


def _pick_lane_tile(HW, C, O, vmem_budget_bytes, itemsize=4):
    """Largest lane tile whose double-buffered working set fits the budget.

    Returns the full HW when HW < 128 (block == full dim is always legal);
    otherwise a multiple of 128 with 2 * (C + O) * thw * itemsize <= budget,
    additionally capped at round_down(HW, 128) so the block never exceeds the
    array extent by more than the ragged last tile.
    """
    if HW < 128:
        return HW
    by_vmem = vmem_budget_bytes // (2 * itemsize * (C + O))
    thw = min(_round_down(HW, 128), _round_down(by_vmem, 128))
    return max(thw, 128)


def to_rgb_forward(x_nchw, weight, bias, *, vmem_budget_bytes=24 * 1024 * 1024):
    """x_nchw: (N, C, H, W) f32; weight: (O, C) already lr-scaled; bias: (O,)."""
    N, C, H, W = x_nchw.shape
    O = weight.shape[0]
    HW = H * W

    thw = _pick_lane_tile(HW, C, O, vmem_budget_bytes)
    num_j = pl.cdiv(HW, thw)

    # v7x has 2 TensorCores: guarantee >= 2 parallel grid points for the
    # small-map ToRGB layers so one core is not left idle.
    if N == 1 and num_j == 1 and thw % 256 == 0:
        thw //= 2
        num_j = pl.cdiv(HW, thw)

    x = x_nchw.reshape(N, C, HW)        # free view, no transpose, no pad
    b2d = bias.reshape(O, 1)

    cost = pl.CostEstimate(
        flops=2 * N * O * C * HW,
        transcendentals=0,
        bytes_accessed=4 * N * HW * (C + O) + 4 * O * C + 4 * O,
    )

    out = pl.pallas_call(
        _to_rgb_kernel,
        out_shape=jax.ShapeDtypeStruct((N, O, HW), x_nchw.dtype),
        grid_spec=pltpu.PrefetchScalarGridSpec(
            num_scalar_prefetch=0,
            grid=(N, num_j),
            in_specs=[
                pl.BlockSpec((pl.Squeezed(), C, thw), lambda n, j: (n, 0, j)),
                pl.BlockSpec((O, C), lambda n, j: (0, 0)),
                pl.BlockSpec((O, 1), lambda n, j: (0, 0)),
            ],
            out_specs=pl.BlockSpec((pl.Squeezed(), O, thw),
                                   lambda n, j: (n, 0, j)),
        ),
        compiler_params=pltpu.CompilerParams(
            dimension_semantics=("parallel", "parallel"),
            vmem_limit_bytes=32 * 1024 * 1024,
        ),
        cost_estimate=cost,
    )(x, weight, b2d)

    return out.reshape(N, O, H, W)


def _reference(x_nchw, weight, bias):
    # Pure-JAX reference: 1x1 conv as einsum + bias (no activation in ToRGB).
    y = jnp.einsum("nchw,oc->nohw", x_nchw, weight,
                   precision=jax.lax.Precision.HIGHEST)
    return y + bias[None, :, None, None]


if __name__ == "__main__":
    key = jax.random.PRNGKey(0)
    k_x, k_w, k_b = jax.random.split(key, 3)

    N, C, H, W = 2, 32, 16, 16   # feature map going to RGB
    O = 3                        # RGB output channels

    x = jax.random.normal(k_x, (N, C, H, W), dtype=jnp.float32)

    # ln.Conv2d parameters: weight (O, C, 1, 1) ~ N(0,1), equalized-lr scale
    # = gain / sqrt(fan_in) with gain = 0.03 (ToRGB); bias made nonzero here
    # to exercise the bias path (module init would zero it).
    w_raw = jax.random.normal(k_w, (O, C), dtype=jnp.float32)
    lr_scale = 0.03 / math.sqrt(C * 1 * 1)
    weight = w_raw * lr_scale
    bias = 0.1 * jax.random.normal(k_b, (O,), dtype=jnp.float32)

    out = jax.block_until_ready(to_rgb_forward(x, weight, bias))

    ref = _reference(x, weight, bias)
    assert out.shape == (N, O, H, W)
    assert jnp.allclose(out, ref, atol=1e-5, rtol=1e-5)

    print("KERNEL_OK")
</pallas_src>

<mosaic_0001>
module attributes {stable_mosaic.version = 11 : i64} {
  func.func @_to_rgb_kernel(%arg0: i32, %arg1: i32, %arg2: memref<1x32x256xf32, #tpu.memory_space<vmem>>, %arg3: memref<3x32xf32, #tpu.memory_space<vmem>>, %arg4: memref<3x1xf32, #tpu.memory_space<vmem>>, %arg5: memref<1x3x256xf32, #tpu.memory_space<vmem>>) attributes {dimension_semantics = [#tpu.dimension_semantics<parallel>, #tpu.dimension_semantics<parallel>], iteration_bounds = array<i64: 2, 1>, scalar_prefetch = 0 : i64, scratch_operands = 0 : i64, tpu.core_type = #tpu.core_type<tc>, window_params = [{transform_indices = @transform_0, window_bounds = array<i64: 1, 32, 256>}, {pipeline_mode = #tpu.pipeline_mode<synchronous>, transform_indices = @transform_1, window_bounds = array<i64: 3, 32>}, {pipeline_mode = #tpu.pipeline_mode<synchronous>, transform_indices = @transform_2, window_bounds = array<i64: 3, 1>}, {transform_indices = @transform_3, window_bounds = array<i64: 1, 3, 256>}]} {
    %c0 = arith.constant 0 : index
    %c0_0 = arith.constant 0 : index
    %0 = vector.load %arg3[%c0, %c0_0] : memref<3x32xf32, #tpu.memory_space<vmem>>, vector<3x32xf32>
    %c0_1 = arith.constant 0 : index
    %c0_2 = arith.constant 0 : index
    %c0_3 = arith.constant 0 : index
    %1 = vector.load %arg2[%c0_1, %c0_2, %c0_3] : memref<1x32x256xf32, #tpu.memory_space<vmem>>, vector<1x32x256xf32>
    %2 = vector.shape_cast %1 : vector<1x32x256xf32> to vector<32x256xf32>
    %cst = arith.constant dense<0.000000e+00> : vector<3x256xf32>
    %3 = tpu.matmul %0, %2, %cst {dimension_numbers = #tpu.dot_dimension_numbers<[1], [0], [0], [1], [0, 0, 1, 1], [], []>, precision = #tpu.contract_precision<fp32>} : vector<3x32xf32>, vector<32x256xf32>, vector<3x256xf32> -> vector<3x256xf32>
    %c0_4 = arith.constant 0 : index
    %c0_5 = arith.constant 0 : index
    %4 = vector.load %arg4[%c0_4, %c0_5] : memref<3x1xf32, #tpu.memory_space<vmem>>, vector<3x1xf32>
    %5 = vector.broadcast %4 : vector<3x1xf32> to vector<3x256xf32>
    %6 = arith.addf %3, %5 : vector<3x256xf32>
    %c0_6 = arith.constant 0 : index
    %c0_7 = arith.constant 0 : index
    %c0_8 = arith.constant 0 : index
    %7 = vector.load %arg5[%c0_6, %c0_7, %c0_8] : memref<1x3x256xf32, #tpu.memory_space<vmem>>, vector<1x3x256xf32>
    %8 = vector.shape_cast %7 : vector<1x3x256xf32> to vector<3x256xf32>
    %9 = vector.shape_cast %6 : vector<3x256xf32> to vector<1x3x256xf32>
    tpu.vector_store %arg5[%c0_6, %c0_7, %c0_8], %9 {strides = array<i32>} : memref<1x3x256xf32, #tpu.memory_space<vmem>>, vector<1x3x256xf32>,
    return
  }
  func.func @transform_0(%arg0: i32, %arg1: i32) -> (i32, i32, i32) {
    %c0_i32 = arith.constant 0 : i32
    %c0_i32_0 = arith.constant 0 : i32
    return %arg0, %c0_i32, %arg1 : i32, i32, i32
  }
  func.func @transform_1(%arg0: i32, %arg1: i32) -> (i32, i32) {
    %c0_i32 = arith.constant 0 : i32
    %c0_i32_0 = arith.constant 0 : i32
    %c0_i32_1 = arith.constant 0 : i32
    return %c0_i32, %c0_i32_0 : i32, i32
  }
  func.func @transform_2(%arg0: i32, %arg1: i32) -> (i32, i32) {
    %c0_i32 = arith.constant 0 : i32
    %c0_i32_0 = arith.constant 0 : i32
    %c0_i32_1 = arith.constant 0 : i32
    return %c0_i32, %c0_i32_0 : i32, i32
  }
  func.func @transform_3(%arg0: i32, %arg1: i32) -> (i32, i32, i32) {
    %c0_i32 = arith.constant 0 : i32
    %c0_i32_0 = arith.constant 0 : i32
    return %arg0, %c0_i32, %arg1 : i32, i32, i32
  }
}

</mosaic_0001>

<bundles_post_ra>
// kernel: tpu_custom_call.1
= control target key start
LH: loop header
LB: loop body
LE: loop exit
PB: predicated region body
PF: predicated region fallthrough
CT: control target
= control target key end

     0   :  { %8 = vsyncpa [#allocation3], 0  ;;  %s1068_s0 = inlined_call_operand.hbm [shape: f32[2,32,256], index: 0, kind: input, shape index: {}]   ;;  %s1069_s1 = inlined_call_operand.vmem [shape: f32[3,32], index: 1, kind: input, shape index: {}]   ;;  %s1070_s2 = inlined_call_operand.vmem [shape: f32[3,1], index: 2, kind: input, shape index: {}]   ;;  %s1071_s3 = inlined_call_operand.vmem [shape: f32[2,3,256], index: 3, kind: output, shape index: {}]  }
   0x1   :  { %10 = vsyncpa [#allocation3 + $0x1], 0  ;;  %s891_s12 = smov 0   ;;  %s893_s13 = smov 0  }
   0x2   :  { %s895_s14 = smov 0   ;;  %s897_s15 = smov 0  }
   0x3   :  { %s899_s16 = smov 0   ;;  %s901_s17 = smov 0  }
   0x4 LB: > { %s712_s18 = sadd.s32 4294967295, %s866_s17   ;;  %s28_s19 = sadd.s32 1, %s862_s16  ;;  %s866_s17 = sphi %s901_s17, %s16_s17   ;;  %s862_s16 = sphi %s899_s16, %s1078_s16   ;;  %s858_s15 = sphi %s897_s15, %s1077_s15   ;;  %s854_s14 = sphi %s895_s14, %s1076_s14   ;;  %s850_s13 = sphi %s893_s13, %s1075_s13   ;;  %s846_s12 = sphi %s891_s12, %s1074_s12  }
   0x5   : > { %p30_p0 = scmp.ge.s32.totalorder %s28_s19, 2  ;;  %s37_s20 = sadd.s32 1, %s854_s14 }
   0x6   : > { %p44_p1 = scmp.ne.s32.totalorder %s854_s14, %s850_s13  ;;  %p45_p2 = scmp.eq.s32.totalorder %s866_s17, 0 }
   0x7   : > { %s1080_s19 = smov (%p30_p0, %s28_s19), 0  ;;  %p50_p4 = scmp.ne.s32.totalorder %s850_s13, %s846_s12 }
   0x8   : > { %p927_p3 = por %p45_p2, %p44_p1  ;;  %s32_s22 = ssub.s32 %s862_s16, %s1080_s19 }
   0x9   : > { %p51_p5 = scmp.eq.s32.totalorder %s712_s18, 0  ;;  %p35_p6 = scmp.eq.s32.totalorder %s32_s22, 0 }
   0xa   : > { %p733_p8 = scmp.lt.s32.totalorder %s866_s17, 2  ;;  %s150_s25 = sand.u32 1, %s854_s14  }
   0xb   : > { %p934_p7 = por %p51_p5, %p50_p4  ;;  %s725_s26 = sshll.u32 %s862_s16, 6 }
   0xc   : > { %s940_s24 = scalar_select %p35_p6, %s854_s14, %s37_s20  }
   0xd   : > { %s716_s27 = sshll.u32 %s150_s25, 6  ;;  %s161_s30 = scalar_lea.hbm %s1068_s0, %s725_s26 }
   0xe   : > { %s162_s4 = sshll.u32 %s161_s30, 4  ;;  %s154_s5 = scalar_lea.vmem [#allocation2], %s716_s27  ;;  %s163_s4 = int_to_ptr.hbm [resolvable:$true] %s162_s4 }
   0xf   : > { %s164_s6 = sshll.u32 %s154_s5, 4  ;;  %p730_p9 = pnand %p733_p8, %p927_p3  ;;  %s165_s6 = int_to_ptr.vmem [resolvable:$true] %s164_s6 }
  0x10   : > { %p719_p10 = scmp.ge.s32.totalorder %s866_s17, 1  ;;  %p172_p11 = scmp.lt.s32.totalorder %s866_s17, 3 }
  0x11   : > { %s151_s7 = scalar_lea.sflag [#allocation3], %s150_s25  ;;  %s868_s8 = smov 256  }
  0x12   : > { %s869_s9 = smov 16   ;;  %p173_p12 = pnand %p719_p10, %p172_p11 }
  0x13   : > { %732 = dma.hbm_to_vmem [thread:$0]  (!%p730_p9), %s163_s4, 1024, %s165_s6, %s151_s7, %s868_s8, %s868_s8, %s869_s9  }
  0x14   : > { %176 = sbr.rel (%p173_p12) target bundleno = 198 (0xc6), region = 32  ;;  %s178_s10 = sand.u32 (!%p173_p12), 1, %s850_s13  }
  0x15   : > { %s720_s11 = sshll.u32 (!%p173_p12), %s178_s10, 6  ;;  %s179_s12 = scalar_lea.sflag (!%p173_p12), [#allocation3], %s178_s10 }
  0x16   : > { %s182_s18 = scalar_lea.vmem (!%p173_p12), [#allocation2], %s720_s11 }
  0x19   : > { %841 = dma.done.wait (%p934_p7), %s179_s12, 1024  }
  0x1a   : > { %843 = vsyncadd (%p934_p7), %s179_s12, 4294966272  ;;  %v870_v0 = vmov 0   ;;  %vm236_vm0 = vcmask 261120   ;;  %v228_v1 = vld [vmem:[%s182_s18 + $0x30] sm:$0xff]  ;;  %v226_v2 = vld [vmem:[%s182_s18 + $0x20] sm:$0xff]  ;;  %p212_p13 = scmp.lt.s32.totalorder %s858_s15, 1 }
  0x1b   : > { %785 = vset.pattern.permute.xlu0 %v870_v0  ;;  %v224_v3 = vld [vmem:[%s182_s18 + $0x10] sm:$0xff]  ;;  %v956_v4 = vand.u32 4294901760, %v228_v1  ;;  %v958_v5 = vand.u32 4294901760, %v226_v2  ;;  %v222_v7 = vld [vmem:[%s182_s18] sm:$0xff]  ;;  %v229_v11 = vld [vmem:[%s182_s18 + $0x38] sm:$0xff]  ;;  %vm613_vm1 = vcmask 1043456  }
  0x1c   : > { %v960_v6 = vand.u32 4294901760, %v224_v3  ;;  %v221_v8 = vld [vmem:[%s1069_s1] sm:$0x7]  ;;  %v965_v9 = vand.u32 4294901760, %v222_v7  ;;  %v227_v12 = vld [vmem:[%s182_s18 + $0x28] sm:$0xff]  ;;  %v225_v13 = vld [vmem:[%s182_s18 + $0x18] sm:$0xff] }
  0x1d   : > { %v238_v10 = vsel %vm236_vm0, %v221_v8, 0  ;;  %v282_v14 = vsub.f32 %v228_v1, %v956_v4  ;;  %253 = vmatpush.msra.mxu0 %v956_v4  ;;  %v288_v15 = vsub.f32 %v226_v2, %v958_v5  ;;  %353 = vmatpush.msra.mxu3 %v956_v4  ;;  %v223_v18 = vld [vmem:[%s182_s18 + $0x8] sm:$0xff]  ;;  %v230_v19 = vld [vmem:[%s1070_s2] sm:$0x7]  ;;  %v982_v21 = vand.u32 4294901760, %v229_v11  ;;  %s1082_s15 = smov (!%p212_p13, %s858_s15), 1 }
  0x1e   : > { %v972_v16 = vsub.f32 %v224_v3, %v960_v6  ;;  %v974_v17 = vand.u32 4294901760, %v238_v10  ;;  %v980_v20 = vsub.f32 %v222_v7, %v965_v9  ;;  %v984_v22 = vand.u32 4294901760, %v227_v12  ;;  %233 = vperm.xlu0 %785, %v230_v19   ;;  %s726_s25 = sshll.u32 %s1082_s15, 3 }
  0x1f   : > { %v986_v23 = vand.u32 4294901760, %v225_v13  ;;  %324 = vmatpush.msra.mxu2 %v282_v14  ;;  %255 = vmatpush.msra.mxu0 %v958_v5  ;;  %v283_v24 = vand.u32 4294901760, %v282_v14  ;;  %v289_v25 = vand.u32 4294901760, %v288_v15  ;;  %v467_v28 = vsub.f32 %v229_v11, %v982_v21  ;;  %s219_s28 = scalar_lea.vmem %s1071_s3, %s726_s25 }
  0x20   : > { %v990_v26 = vsub.f32 %v238_v10, %v974_v17  ;;  %v295_v27 = vand.u32 4294901760, %v972_v16  ;;  %355 = vmatpush.msra.mxu3 %v958_v5  ;;  %v301_v29 = vand.u32 4294901760, %v980_v20  ;;  %v997_v30 = vsub.f32 %v227_v12, %v984_v22 }
  0x21   : > { %v999_v31 = vand.u32 4294901760, %v223_v18  ;;  %327 = vmatpush.msra.mxu2 %v288_v15  ;;  %v284_v32 = vsub.f32 %v282_v14, %v283_v24  ;;  %257 = vmatpush.msra.mxu0 %v960_v6  ;;  %v290_v33 = vsub.f32 %v288_v15, %v289_v25  ;;  %v468_v36 = vand.u32 4294901760, %v467_v28 }
  0x22   : > { %v296_v34 = vsub.f32 %v972_v16, %v295_v27  ;;  %v1004_v35 = vand.u32 4294901760, %v990_v26  ;;  %357 = vmatpush.msra.mxu3 %v960_v6  ;;  %v474_v37 = vand.u32 4294901760, %v997_v30  ;;  %v479_v38 = vsub.f32 %v225_v13, %v986_v23 }
  0x23   : > { %v285_v39 = vand.u32 4294901760, %v284_v32  ;;  %330 = vmatpush.msra.mxu2 %v972_v16  ;;  %v291_v40 = vand.u32 4294901760, %v290_v33  ;;  %259 = vmatpush.msra.mxu0 %v965_v9  ;;  %v302_v42 = vsub.f32 %v980_v20, %v301_v29  ;;  %v469_v43 = vsub.f32 %v467_v28, %v468_v36 }
  0x24   : > { %v263_v41 = vsub.f32 %v990_v26, %v1004_v35  ;;  %359 = vmatpush.msra.mxu3 %v965_v9  ;;  %v475_v44 = vsub.f32 %v997_v30, %v474_v37  ;;  %v480_v45 = vand.u32 4294901760, %v479_v38  ;;  %v297_v46 = vand.u32 4294901760, %v296_v34 }
  0x25   : > { %382 = vmatpush.msrb.mxu0 %v283_v24  ;;  %286 = vmatpush.msra.mxu1 %v285_v39  ;;  %v485_v48 = vsub.f32 %v223_v18, %v999_v31  ;;  %v470_v49 = vand.u32 4294901760, %v469_v43  ;;  %v303_v52 = vand.u32 4294901760, %v302_v42 }
  0x26   : > { %333 = vmatpush.msra.mxu2 %v980_v20  ;;  %v264_v47 = vand.u32 4294901760, %v263_v41  ;;  %363 = vmatmul.f32.vlgmr.msra.gmra.mxu3 %v1004_v35  ;;  %v476_v50 = vand.u32 4294901760, %v475_v44  ;;  %v481_v51 = vsub.f32 %v479_v38, %v480_v45 }
  0x27   : > { %336 = vmatmul.f32.vlgmr.msra.gmra.mxu2 %v990_v26  ;;  %292 = vmatpush.msra.mxu1 %v291_v40  ;;  %v486_v53 = vand.u32 4294901760, %v485_v48 }
  0x28   : > { %438 = vmatpush.msrb.mxu2 %v982_v21  ;;  %265 = vmatmul.f32.vlgmr.msra.gmra.mxu0 %v264_v47  ;;  %v482_v55 = vand.u32 4294901760, %v481_v51 }
  0x29   : > { %471 = vmatpush.msrb.mxu3 %v470_v49  ;;  %298 = vmatpush.msra.mxu1 %v297_v46  ;;  %v487_v54 = vsub.f32 %v485_v48, %v486_v53 }
  0x2a   : > { %440 = vmatpush.msrb.mxu2 %v984_v22  ;;  %386 = vmatpush.msrb.mxu0 %v289_v25 }
  0x2b   : > { %477 = vmatpush.msrb.mxu3 %v476_v50  ;;  %304 = vmatpush.msra.mxu1 %v303_v52  ;;  %v488_v56 = vand.u32 4294901760, %v487_v54 }
  0x2c   : > { %442 = vmatpush.msrb.mxu2 %v986_v23  ;;  %306 = vmatmul.f32.vlgmr.msra.gmra.mxu1 %v974_v17 }
  0x2d   : > { %390 = vmatpush.msrb.mxu0 %v295_v27  ;;  %413 = vmatpush.msrb.mxu1 %v956_v4 }
  0x2e   : > { %444 = vmatpush.msrb.mxu2 %v999_v31  ;;  %483 = vmatpush.msrb.mxu3 %v482_v55 }
  0x2f   : > { %394 = vmatpush.msrb.mxu0 %v301_v29  ;;  %415 = vmatpush.msrb.mxu1 %v958_v5 }
  0x30   : > { %450 = vmatmul.f32.vlgmr.msrb.gmra.mxu2 %v264_v47  ;;  %489 = vmatpush.msrb.mxu3 %v488_v56 }
  0x31   : > { %567 = vmatpush.msra.mxu2 %v468_v36  ;;  %417 = vmatpush.msrb.mxu1 %v960_v6 }
  0x32   : > { %396 = vmatmul.f32.vlgmr.msrb.gmra.mxu0 %v974_v17  ;;  %491 = vmatmul.f32.vlgmr.msrb.gmra.mxu3 %v974_v17 }
  0x33   : > { %509 = vmatpush.msra.mxu0 %v467_v28  ;;  %419 = vmatpush.msrb.mxu1 %v965_v9 }
  0x34   : > { %571 = vmatpush.msra.mxu2 %v474_v37  ;;  %598 = vmatpush.msra.mxu3 %v982_v21 }
  0x35   : > { %421 = vmatmul.f32.vlgmr.msrb.gmra.mxu1 %v974_v17  ;;  %512 = vmatpush.msra.mxu0 %v997_v30 }
  0x36   : > { %538 = vmatpush.msra.mxu1 %v982_v21  ;;  %575 = vmatpush.msra.mxu2 %v480_v45 }
  0x37   : > { %600 = vmatpush.msra.mxu3 %v984_v22  ;;  %515 = vmatpush.msra.mxu0 %v479_v38 }
  0x38   : > { %540 = vmatpush.msra.mxu1 %v984_v22  ;;  %579 = vmatpush.msra.mxu2 %v486_v53 }
  0x39   : > { %602 = vmatpush.msra.mxu3 %v986_v23  ;;  %518 = vmatpush.msra.mxu0 %v485_v48 }
  0x3a   : > { %542 = vmatpush.msra.mxu1 %v986_v23  ;;  %581 = vmatmul.f32.vlgmr.msra.gmra.mxu2 %v974_v17 }
  0x3b   : > { %604 = vmatpush.msra.mxu3 %v999_v31  ;;  %521 = vmatmul.f32.vlgmr.msra.gmra.mxu0 %v990_v26 }
  0x3c   : > { %544 = vmatpush.msra.mxu1 %v999_v31  ;;  %606 = vmatmul.f32.vlgmr.msra.gmra.mxu3 %v974_v17 }
  0x3d   : > { %548 = vmatmul.f32.vlgmr.msra.gmra.mxu1 %v1004_v35 }
  0x90   : > { %v234_v60 = vpop.permute.xlu0 %233 }
  0xa5   : > { %v266_v57 = vpop.f32.mrf.mxu0 }
  0xa6   : > { %v267_v62 = vadd.f32 %v266_v57, %v234_v60 }
  0xa9   : > { %v307_v58 = vpop.f32.mrf.mxu1  ;;  %v364_v61 = vpop.f32.mrf.mxu3 }
  0xaa   : > { %v337_v59 = vpop.f32.mrf.mxu2  ;;  %v308_v1 = vadd.f32 %v307_v58, %v267_v62 }
  0xac   : > { %v338_v5 = vadd.f32 %v337_v59, %v308_v1 }
  0xae   : > { %v365_v10 = vadd.f32 %v364_v61, %v338_v5 }
  0xaf   : > { %v397_v63 = vpop.f32.mrf.mxu0 }
  0xb0   : > { %v398_v13 = vadd.f32 %v397_v63, %v365_v10 }
  0xb2   : > { %v422_v0 = vpop.f32.mrf.mxu1 }
  0xb3   : > { %v451_v2 = vpop.f32.mrf.mxu2  ;;  %v423_v17 = vadd.f32 %v422_v0, %v398_v13 }
  0xb4   : > { %v452_v3 = vadd.f32 %v451_v2, %v234_v60 }
  0xb5   : > { %v492_v4 = vpop.f32.mrf.mxu3 }
  0xb6   : > { %v493_v6 = vadd.f32 %v492_v4, %v452_v3 }
  0xb8   : > { %v522_v7 = vpop.f32.mrf.mxu0 }
  0xb9   : > { %v523_v8 = vadd.f32 %v522_v7, %v493_v6 }
  0xba   : > { %v549_v9 = vpop.f32.mrf.mxu1 }
  0xbb   : > { %v550_v11 = vadd.f32 %v549_v9, %v523_v8 }
  0xbd   : > { %v582_v12 = vpop.f32.mrf.mxu2 }
  0xbe   : > { %v583_v14 = vadd.f32 %v582_v12, %v550_v11 }
  0xbf   : > { %v607_v15 = vpop.f32.mrf.mxu3 }
  0xc0   : > { %v608_v16 = vadd.f32 %v607_v15, %v583_v14 }
  0xc2   : > { %v612_v18 = vrot.slane %v608_v16, 4 }
  0xc4   : > { %v614_v19 = vsel %vm613_vm1, %v423_v17, %v612_v18 }
  0xc5   : > { %616 = vst [vmem:[%s219_s28] sm:$0x77] %v614_v19 }
  0xc6 PF: > { %s16_s17 = sadd.s32 1, %s866_s17   ;;  %s1074_s12 = smov %s850_s13 }
  0xc7   : > { %p13_p0 = scmp.ge.s32.totalorder %s16_s17, 4   ;;  %s1075_s13 = smov %s854_s14 }
  0xc8   : > { %s1076_s14 = smov %s940_s24  ;;  %s1077_s15 = smov %s862_s16 }
  0xc9   : > { %s1078_s16 = smov %s1080_s19  ;;  %15 = sbr.rel (!%p13_p0) target bundleno = 4 (0x4), region = 72 }
  0xce   :  { %647 = vsyncpa [#allocation3], 1 }
  0xcf   :  { %649 = vsyncpa [#allocation3 + $0x1], 1 }

</bundles_post_ra>
